<compile_context>
chip_gen: v5e
topology: v5e:2x2
jax: 0.10.0
libtpu: 0.0.40
codegen_flags: <defaults>
</compile_context>

<pallas_src>
import functools
import math

import jax
import jax.numpy as jnp
from jax.experimental import pallas as pl
from jax.experimental.pallas import tpu as pltpu


def _attention_kernel(enc_ref, wqkv_ref, bv_ref, out_ref, *, mxu_dtype):
    TB, S, D = enc_ref.shape

    # Fused QKV projection: one (TB*S, D) x (D, 3D) MXU matmul, f32 accumulation.
    x = enc_ref[...].reshape(TB * S, D).astype(mxu_dtype)
    qkv = jnp.dot(x, wqkv_ref[...], preferred_element_type=jnp.float32)      # (TB*S, 3D)

    # Lane-aligned slices (D is a multiple of 128 for the shapes we target).
    q = qkv[:, :D]                      # 1/sqrt(D) already folded into these weight columns
    k = qkv[:, D:2 * D]
    v = qkv[:, 2 * D:] + bv_ref[...]    # value bias (f32)

    qb = q.reshape(TB, S, D).astype(mxu_dtype)
    kb = k.reshape(TB, S, D).astype(mxu_dtype)
    vb = v.reshape(TB, S, D).astype(mxu_dtype)

    # scores = q @ k^T (batched over TB). Contracting the minor dim of both operands keeps the
    # k "transpose" inside the MXU feed instead of materializing it through the XLU.
    scores = jnp.einsum("bqd,bkd->bqk", qb, kb, preferred_element_type=jnp.float32)

    # Numerically stable softmax, all f32. Exact divide: the (TB, S, 1) denominator is tiny,
    # so the exact path is effectively free (approx reciprocal dropped per review).
    m = jnp.max(scores, axis=-1, keepdims=True)
    e = jnp.exp(scores - m)
    attn = e / jnp.sum(e, axis=-1, keepdims=True)

    out = jnp.einsum("bqk,bkd->bqd", attn.astype(mxu_dtype), vb,
                     preferred_element_type=jnp.float32)                     # (TB, S, D)
    out_ref[...] = out.astype(out_ref.dtype)


def _pick_batch_block(B, S):
    """Batch elements per grid step: target ~128 fused LHS rows for the MXU, but keep >= 2
    grid steps whenever B >= 2 (both v7x TensorCores get work), and require TB | B."""
    target_rows = 128
    tb = max(1, min(B, target_rows // max(S, 1)))
    while tb > 1 and (B % tb != 0 or B // tb < 2):
        tb -= 1
    return tb


def _vmem_cap_bytes():
    """~25% headroom under this generation's VMEM capacity (64 MiB v7x, 128 MiB v5e/v6e)."""
    try:
        cap = pltpu.get_tpu_info().vmem_capacity_bytes
    except Exception:
        cap = 64 * 1024 * 1024      # conservative (v7x) default if the query is unavailable
    return int(cap) * 3 // 4


def _vmem_estimate_bytes(TB, S, D, io_itemsize, mxu_itemsize):
    enc = 2 * TB * S * D * io_itemsize              # double-buffered encoding block
    out = 2 * TB * S * D * io_itemsize              # double-buffered output block
    wts = 2 * (D * 3 * D * mxu_itemsize + D * 4)    # fused weights + bias (worst case 2x buffered)
    inter = (TB * S * 3 * D + 3 * TB * S * S + TB * S * D) * 4   # qkv, scores/e/attn, out (f32)
    return enc + out + wts + inter


def single_head_attention(encoding, wq, wk, wv, bv, *, mxu_dtype=jnp.bfloat16):
    """encoding: (B, S, D); wq/wk/wv: (D, D) in PyTorch (out, in) layout; bv: (D,)."""
    B, S, D = encoding.shape
    out_dt = encoding.dtype
    scale = 1.0 / math.sqrt(D)

    # Host-side layout plumbing (zero kernel-time cost): fuse the three projections into a
    # single (in, 3*out) weight and fold the attention scale into the Q columns.
    wqkv = jnp.concatenate([wq.T * scale, wk.T, wv.T], axis=1).astype(mxu_dtype)   # (D, 3D)
    bv2 = bv.reshape(1, D).astype(jnp.float32)

    TB = _pick_batch_block(B, S)
    grid = (B // TB,)

    vmem_limit = int(min(
        max(2 * _vmem_estimate_bytes(TB, S, D,
                                     jnp.dtype(out_dt).itemsize,
                                     jnp.dtype(mxu_dtype).itemsize),
            32 * 1024 * 1024),
        _vmem_cap_bytes()))

    kernel = functools.partial(_attention_kernel, mxu_dtype=mxu_dtype)

    # TODO(synk): for non-toy S, switch to a flash-style (B//TB, S//tq) grid with online softmax
    # (tq/tkv ~512 on v7x, ~1024 on v5e/v6e) so the (S, S) score intermediates stay bounded.
    def build(weight_spec_kwargs):
        return pl.pallas_call(
            kernel,
            out_shape=jax.ShapeDtypeStruct((B, S, D), out_dt),
            grid_spec=pltpu.PrefetchScalarGridSpec(
                num_scalar_prefetch=0,
                grid=grid,
                in_specs=[
                    pl.BlockSpec((TB, S, D), lambda b: (b, 0, 0)),              # encoding
                    pl.BlockSpec((D, 3 * D), lambda b: (0, 0),                  # fused W_qkv^T
                                 **weight_spec_kwargs),
                    pl.BlockSpec((1, D), lambda b: (0, 0),                      # b_v
                                 **weight_spec_kwargs),
                ],
                out_specs=pl.BlockSpec((TB, S, D), lambda b: (b, 0, 0)),
            ),
            compiler_params=pltpu.CompilerParams(
                dimension_semantics=("parallel",),     # megacore: batch blocks shard across TCs
                vmem_limit_bytes=vmem_limit,
            ),
        )

    try:
        # Constant-index weights are never re-DMA'd; single-buffering halves their VMEM
        # footprint (matters at production D, free here).
        return build(dict(pipeline_mode=pl.Buffered(1)))(encoding, wqkv, bv2)
    except Exception:
        # Some Pallas revisions reject pipeline_mode on top-level BlockSpecs; default
        # double-buffering is functionally identical (weights are tiny at demo D).
        return build({})(encoding, wqkv, bv2)


def _reference(encoding, wq, wk, wv, bv):
    q = encoding @ wq.T
    k = encoding @ wk.T
    v = encoding @ wv.T + bv
    d = encoding.shape[-1]
    scores = jnp.einsum("bqd,bkd->bqk", q, k) / math.sqrt(d)
    attn = jax.nn.softmax(scores, axis=-1)
    return jnp.einsum("bqk,bkd->bqd", attn, v)


if __name__ == "__main__":
    # Small but TPU-friendly shapes: D = 128 keeps every block (8, 128)-aligned and the
    # output stores lane-dense (unmasked vst).
    B, S, D = 2, 8, 128

    key = jax.random.PRNGKey(0)
    k_enc, k_wq, k_wk, k_wv, k_bv = jax.random.split(key, 5)

    # Deterministic synthetic parameters (PyTorch Linear-style (out, in) weights).
    bound = 1.0 / math.sqrt(D)
    encoding = jax.random.normal(k_enc, (B, S, D), dtype=jnp.float32)
    wq = jax.random.uniform(k_wq, (D, D), jnp.float32, -bound, bound)
    wk = jax.random.uniform(k_wk, (D, D), jnp.float32, -bound, bound)
    wv = jax.random.uniform(k_wv, (D, D), jnp.float32, -bound, bound)
    bv = jax.random.uniform(k_bv, (D,), jnp.float32, -bound, bound)

    out = jax.block_until_ready(single_head_attention(encoding, wq, wk, wv, bv))
    ref = _reference(encoding, wq, wk, wv, bv)

    assert out.shape == (B, S, D)
    # bf16 MXU operands (f32 accumulation, f32 exact-divide softmax) give ~1e-3-level absolute
    # error vs the pure-f32 reference at these magnitudes; tolerance sized accordingly.
    assert jnp.allclose(out, ref, atol=1e-2, rtol=1e-2), "mismatch vs pure-JAX reference"

    print("KERNEL_OK")
</pallas_src>

<mosaic_0001>
module attributes {stable_mosaic.version = 11 : i64} {
  func.func @_attention_kernel(%arg0: i32, %arg1: memref<1x8x128xf32, #tpu.memory_space<vmem>>, %arg2: memref<128x384xbf16, #tpu.memory_space<vmem>>, %arg3: memref<1x128xf32, #tpu.memory_space<vmem>>, %arg4: memref<1x8x128xf32, #tpu.memory_space<vmem>>) attributes {dimension_semantics = [#tpu.dimension_semantics<parallel>], iteration_bounds = array<i64: 2>, scalar_prefetch = 0 : i64, scratch_operands = 0 : i64, tpu.core_type = #tpu.core_type<tc>, window_params = [{transform_indices = @transform_0, window_bounds = array<i64: 1, 8, 128>}, {pipeline_mode = #tpu.pipeline_mode<synchronous>, transform_indices = @transform_1, window_bounds = array<i64: 128, 384>}, {pipeline_mode = #tpu.pipeline_mode<synchronous>, transform_indices = @transform_2, window_bounds = array<i64: 1, 128>}, {transform_indices = @transform_3, window_bounds = array<i64: 1, 8, 128>}]} {
    %c0 = arith.constant 0 : index
    %c0_0 = arith.constant 0 : index
    %c0_1 = arith.constant 0 : index
    %0 = vector.load %arg1[%c0, %c0_0, %c0_1] : memref<1x8x128xf32, #tpu.memory_space<vmem>>, vector<1x8x128xf32>
    %1 = vector.shape_cast %0 : vector<1x8x128xf32> to vector<8x128xf32>
    %2 = arith.truncf %1 : vector<8x128xf32> to vector<8x128xbf16>
    %c0_2 = arith.constant 0 : index
    %c0_3 = arith.constant 0 : index
    %3 = vector.load %arg2[%c0_2, %c0_3] : memref<128x384xbf16, #tpu.memory_space<vmem>>, vector<128x384xbf16>
    %cst = arith.constant dense<0.000000e+00> : vector<8x384xf32>
    %4 = tpu.matmul %2, %3, %cst {dimension_numbers = #tpu.dot_dimension_numbers<[1], [0], [0], [1], [0, 0, 1, 1], [], []>} : vector<8x128xbf16>, vector<128x384xbf16>, vector<8x384xf32> -> vector<8x384xf32>
    %5 = vector.extract_strided_slice %4 {offsets = [0, 0], sizes = [8, 128], strides = [1, 1]} : vector<8x384xf32> to vector<8x128xf32>
    %6 = vector.extract_strided_slice %4 {offsets = [0, 128], sizes = [8, 128], strides = [1, 1]} : vector<8x384xf32> to vector<8x128xf32>
    %7 = vector.extract_strided_slice %4 {offsets = [0, 256], sizes = [8, 128], strides = [1, 1]} : vector<8x384xf32> to vector<8x128xf32>
    %c0_4 = arith.constant 0 : index
    %c0_5 = arith.constant 0 : index
    %8 = vector.load %arg3[%c0_4, %c0_5] : memref<1x128xf32, #tpu.memory_space<vmem>>, vector<1x128xf32>
    %9 = vector.broadcast %8 : vector<1x128xf32> to vector<8x128xf32>
    %10 = arith.addf %7, %9 : vector<8x128xf32>
    %11 = vector.shape_cast %5 : vector<8x128xf32> to vector<1x8x128xf32>
    %12 = arith.truncf %11 : vector<1x8x128xf32> to vector<1x8x128xbf16>
    %13 = vector.shape_cast %6 : vector<8x128xf32> to vector<1x8x128xf32>
    %14 = arith.truncf %13 : vector<1x8x128xf32> to vector<1x8x128xbf16>
    %15 = vector.shape_cast %10 : vector<8x128xf32> to vector<1x8x128xf32>
    %16 = arith.truncf %15 : vector<1x8x128xf32> to vector<1x8x128xbf16>
    "tpu.trace_start"() <{level = 10 : i32, message = "bqd,bkd->bqk"}> : () -> ()
    %cst_6 = arith.constant dense<0.000000e+00> : vector<1x8x8xf32>
    %17 = tpu.matmul %12, %14, %cst_6 {dimension_numbers = #tpu.dot_dimension_numbers<[2], [2], [1], [1], [0, 0, 0, 1, 1, 1], [0], [0]>} : vector<1x8x128xbf16>, vector<1x8x128xbf16>, vector<1x8x8xf32> -> vector<1x8x8xf32>
    "tpu.trace_stop"() : () -> ()
    %cst_7 = arith.constant dense<0xFF800000> : vector<1x8xf32>
    %18 = vector.multi_reduction <maximumf>, %17, %cst_7 [2] : vector<1x8x8xf32> to vector<1x8xf32>
    %19 = vector.shape_cast %18 : vector<1x8xf32> to vector<1x8x1xf32>
    %20 = vector.broadcast %19 : vector<1x8x1xf32> to vector<1x8x8xf32>
    %21 = arith.subf %17, %20 : vector<1x8x8xf32>
    %22 = math.exp %21 : vector<1x8x8xf32>
    %cst_8 = arith.constant dense<0.000000e+00> : vector<1x8xf32>
    %23 = vector.multi_reduction <add>, %22, %cst_8 [2] : vector<1x8x8xf32> to vector<1x8xf32>
    %24 = vector.shape_cast %23 : vector<1x8xf32> to vector<1x8x1xf32>
    %25 = vector.broadcast %24 : vector<1x8x1xf32> to vector<1x8x8xf32>
    %26 = arith.divf %22, %25 : vector<1x8x8xf32>
    %27 = arith.truncf %26 : vector<1x8x8xf32> to vector<1x8x8xbf16>
    "tpu.trace_start"() <{level = 10 : i32, message = "bqk,bkd->bqd"}> : () -> ()
    %cst_9 = arith.constant dense<0.000000e+00> : vector<1x8x128xf32>
    %28 = tpu.matmul %27, %16, %cst_9 {dimension_numbers = #tpu.dot_dimension_numbers<[2], [1], [1], [2], [0, 0, 0, 1, 1, 2], [0], [0]>} : vector<1x8x8xbf16>, vector<1x8x128xbf16>, vector<1x8x128xf32> -> vector<1x8x128xf32>
    "tpu.trace_stop"() : () -> ()
    %c0_10 = arith.constant 0 : index
    %c0_11 = arith.constant 0 : index
    %c0_12 = arith.constant 0 : index
    %29 = vector.load %arg4[%c0_10, %c0_11, %c0_12] : memref<1x8x128xf32, #tpu.memory_space<vmem>>, vector<1x8x128xf32>
    tpu.vector_store %arg4[%c0_10, %c0_11, %c0_12], %28 {strides = array<i32>} : memref<1x8x128xf32, #tpu.memory_space<vmem>>, vector<1x8x128xf32>,
    return
  }
  func.func @transform_0(%arg0: i32) -> (i32, i32, i32) {
    %c0_i32 = arith.constant 0 : i32
    %c0_i32_0 = arith.constant 0 : i32
    %c0_i32_1 = arith.constant 0 : i32
    return %arg0, %c0_i32, %c0_i32_0 : i32, i32, i32
  }
  func.func @transform_1(%arg0: i32) -> (i32, i32) {
    %c0_i32 = arith.constant 0 : i32
    %c0_i32_0 = arith.constant 0 : i32
    %c0_i32_1 = arith.constant 0 : i32
    return %c0_i32, %c0_i32_0 : i32, i32
  }
  func.func @transform_2(%arg0: i32) -> (i32, i32) {
    %c0_i32 = arith.constant 0 : i32
    %c0_i32_0 = arith.constant 0 : i32
    %c0_i32_1 = arith.constant 0 : i32
    return %c0_i32, %c0_i32_0 : i32, i32
  }
  func.func @transform_3(%arg0: i32) -> (i32, i32, i32) {
    %c0_i32 = arith.constant 0 : i32
    %c0_i32_0 = arith.constant 0 : i32
    %c0_i32_1 = arith.constant 0 : i32
    return %arg0, %c0_i32, %c0_i32_0 : i32, i32, i32
  }
}

module attributes {stable_mosaic.version = 11 : i64} {
  func.func @_attention_kernel(%arg0: i32, %arg1: memref<1x8x128xf32, #tpu.memory_space<vmem>>, %arg2: memref<128x384xbf16, #tpu.memory_space<vmem>>, %arg3: memref<1x128xf32, #tpu.memory_space<vmem>>, %arg4: memref<1x8x128xf32, #tpu.memory_space<vmem>>) attributes {dimension_semantics = [#tpu.dimension_semantics<parallel>], iteration_bounds = array<i64: 2>, scalar_prefetch = 0 : i64, scratch_operands = 0 : i64, tpu.core_type = #tpu.core_type<tc>, window_params = [{transform_indices = @transform_0, window_bounds = array<i64: 1, 8, 128>}, {pipeline_mode = #tpu.pipeline_mode<synchronous>, transform_indices = @transform_1, window_bounds = array<i64: 128, 384>}, {pipeline_mode = #tpu.pipeline_mode<synchronous>, transform_indices = @transform_2, window_bounds = array<i64: 1, 128>}, {transform_indices = @transform_3, window_bounds = array<i64: 1, 8, 128>}]} {
    %c0 = arith.constant 0 : index
    %c0_0 = arith.constant 0 : index
    %c0_1 = arith.constant 0 : index
    %0 = vector.load %arg1[%c0, %c0_0, %c0_1] : memref<1x8x128xf32, #tpu.memory_space<vmem>>, vector<1x8x128xf32>
    %1 = vector.shape_cast %0 : vector<1x8x128xf32> to vector<8x128xf32>
    %2 = arith.truncf %1 : vector<8x128xf32> to vector<8x128xbf16>
    %c0_2 = arith.constant 0 : index
    %c0_3 = arith.constant 0 : index
    %3 = vector.load %arg2[%c0_2, %c0_3] : memref<128x384xbf16, #tpu.memory_space<vmem>>, vector<128x384xbf16>
    %cst = arith.constant dense<0.000000e+00> : vector<8x384xf32>
    %4 = tpu.matmul %2, %3, %cst {dimension_numbers = #tpu.dot_dimension_numbers<[1], [0], [0], [1], [0, 0, 1, 1], [], []>} : vector<8x128xbf16>, vector<128x384xbf16>, vector<8x384xf32> -> vector<8x384xf32>
    %5 = vector.extract_strided_slice %4 {offsets = [0, 0], sizes = [8, 128], strides = [1, 1]} : vector<8x384xf32> to vector<8x128xf32>
    %6 = vector.extract_strided_slice %4 {offsets = [0, 128], sizes = [8, 128], strides = [1, 1]} : vector<8x384xf32> to vector<8x128xf32>
    %7 = vector.extract_strided_slice %4 {offsets = [0, 256], sizes = [8, 128], strides = [1, 1]} : vector<8x384xf32> to vector<8x128xf32>
    %c0_4 = arith.constant 0 : index
    %c0_5 = arith.constant 0 : index
    %8 = vector.load %arg3[%c0_4, %c0_5] : memref<1x128xf32, #tpu.memory_space<vmem>>, vector<1x128xf32>
    %9 = vector.broadcast %8 : vector<1x128xf32> to vector<8x128xf32>
    %10 = arith.addf %7, %9 : vector<8x128xf32>
    %11 = vector.shape_cast %5 : vector<8x128xf32> to vector<1x8x128xf32>
    %12 = arith.truncf %11 : vector<1x8x128xf32> to vector<1x8x128xbf16>
    %13 = vector.shape_cast %6 : vector<8x128xf32> to vector<1x8x128xf32>
    %14 = arith.truncf %13 : vector<1x8x128xf32> to vector<1x8x128xbf16>
    %15 = vector.shape_cast %10 : vector<8x128xf32> to vector<1x8x128xf32>
    %16 = arith.truncf %15 : vector<1x8x128xf32> to vector<1x8x128xbf16>
    "tpu.trace_start"() <{level = 10 : i32, message = "bqd,bkd->bqk"}> : () -> ()
    %cst_6 = arith.constant dense<0.000000e+00> : vector<1x8x8xf32>
    %17 = tpu.matmul %12, %14, %cst_6 {dimension_numbers = #tpu.dot_dimension_numbers<[2], [2], [1], [1], [0, 0, 0, 1, 1, 1], [0], [0]>} : vector<1x8x128xbf16>, vector<1x8x128xbf16>, vector<1x8x8xf32> -> vector<1x8x8xf32>
    "tpu.trace_stop"() : () -> ()
    %cst_7 = arith.constant dense<0xFF800000> : vector<1x8xf32>
    %18 = vector.multi_reduction <maximumf>, %17, %cst_7 [2] : vector<1x8x8xf32> to vector<1x8xf32>
    %19 = vector.shape_cast %18 : vector<1x8xf32> to vector<1x8x1xf32>
    %20 = vector.broadcast %19 : vector<1x8x1xf32> to vector<1x8x8xf32>
    %21 = arith.subf %17, %20 : vector<1x8x8xf32>
    %22 = math.exp %21 : vector<1x8x8xf32>
    %cst_8 = arith.constant dense<0.000000e+00> : vector<1x8xf32>
    %23 = vector.multi_reduction <add>, %22, %cst_8 [2] : vector<1x8x8xf32> to vector<1x8xf32>
    %24 = vector.shape_cast %23 : vector<1x8xf32> to vector<1x8x1xf32>
    %25 = vector.broadcast %24 : vector<1x8x1xf32> to vector<1x8x8xf32>
    %26 = arith.divf %22, %25 : vector<1x8x8xf32>
    %27 = arith.truncf %26 : vector<1x8x8xf32> to vector<1x8x8xbf16>
    "tpu.trace_start"() <{level = 10 : i32, message = "bqk,bkd->bqd"}> : () -> ()
    %cst_9 = arith.constant dense<0.000000e+00> : vector<1x8x128xf32>
    %28 = tpu.matmul %27, %16, %cst_9 {dimension_numbers = #tpu.dot_dimension_numbers<[2], [1], [1], [2], [0, 0, 0, 1, 1, 2], [0], [0]>} : vector<1x8x8xbf16>, vector<1x8x128xbf16>, vector<1x8x128xf32> -> vector<1x8x128xf32>
    "tpu.trace_stop"() : () -> ()
    %c0_10 = arith.constant 0 : index
    %c0_11 = arith.constant 0 : index
    %c0_12 = arith.constant 0 : index
    %29 = vector.load %arg4[%c0_10, %c0_11, %c0_12] : memref<1x8x128xf32, #tpu.memory_space<vmem>>, vector<1x8x128xf32>
    tpu.vector_store %arg4[%c0_10, %c0_11, %c0_12], %28 {strides = array<i32>} : memref<1x8x128xf32, #tpu.memory_space<vmem>>, vector<1x8x128xf32>,
    return
  }
  func.func @transform_0(%arg0: i32) -> (i32, i32, i32) {
    %c0_i32 = arith.constant 0 : i32
    %c0_i32_0 = arith.constant 0 : i32
    %c0_i32_1 = arith.constant 0 : i32
    return %arg0, %c0_i32, %c0_i32_0 : i32, i32, i32
  }
  func.func @transform_1(%arg0: i32) -> (i32, i32) {
    %c0_i32 = arith.constant 0 : i32
    %c0_i32_0 = arith.constant 0 : i32
    %c0_i32_1 = arith.constant 0 : i32
    return %c0_i32, %c0_i32_0 : i32, i32
  }
  func.func @transform_2(%arg0: i32) -> (i32, i32) {
    %c0_i32 = arith.constant 0 : i32
    %c0_i32_0 = arith.constant 0 : i32
    %c0_i32_1 = arith.constant 0 : i32
    return %c0_i32, %c0_i32_0 : i32, i32
  }
  func.func @transform_3(%arg0: i32) -> (i32, i32, i32) {
    %c0_i32 = arith.constant 0 : i32
    %c0_i32_0 = arith.constant 0 : i32
    %c0_i32_1 = arith.constant 0 : i32
    return %arg0, %c0_i32, %c0_i32_0 : i32, i32, i32
  }
}

</mosaic_0001>

<bundles_post_ra>
// kernel: tpu_custom_call.1
= control target key start
LH: loop header
LB: loop body
LE: loop exit
PB: predicated region body
PF: predicated region fallthrough
CT: control target
= control target key end

     0   :  { %8 = vsyncpa [#allocation3], 0  ;;  %s1074_s0 = inlined_call_operand.hbm [shape: f32[2,8,128], index: 0, kind: input, shape index: {}]   ;;  %s1075_s1 = inlined_call_operand.hbm [shape: bf16[128,384], index: 1, kind: input, shape index: {}]   ;;  %s1076_s2 = inlined_call_operand.vmem [shape: f32[1,128], index: 2, kind: input, shape index: {}]   ;;  %s1077_s3 = inlined_call_operand.hbm [shape: f32[2,8,128], index: 3, kind: output, shape index: {}]  }
   0x1   :  { %10 = vsyncpa [#allocation3 + $0x1], 0 }
   0x2   :  { %11 = vsyncpa [#allocation6], 0 }
   0x3   :  { %12 = vsyncpa [#allocation4], 0 }
   0x4   :  { %14 = vsyncpa [#allocation4 + $0x1], 0  ;;  %s925_s12 = smov 0   ;;  %s927_s13 = smov 0  }
   0x5   :  { %s929_s14 = smov 0   ;;  %s931_s15 = smov 0  }
   0x6 LB: > { %s130_s18 = sshll.u32 %s1075_s1, 4  ;;  %s949_s19 = sadd.s32 4294967295, %s900_s15   ;;  %s900_s15 = sphi %s931_s15, %s1087_s15   ;;  %s896_s14 = sphi %s929_s14, %s1086_s14   ;;  %s892_s13 = sphi %s927_s13, %s1085_s13   ;;  %s888_s12 = sphi %s925_s12, %s1084_s12   ;;  %s131_s18 = int_to_ptr.hbm [resolvable:$true] %s130_s18 }
   0x7   : > { %p572_p0 = scmp.ge.s32.totalorder %s900_s15, 1  ;;  %p41_p1 = scmp.eq.s32.totalorder %s949_s19, 0 }
   0x8   : > { %p119_p2 = scmp.lt.s32.totalorder %s900_s15, 3  ;;  %s902_s21 = smov [#allocation5]  }
   0x9   : > { %s132_s22 = sshll.u32 %s902_s21, 4  ;;  %s903_s23 = smov 192   ;;  %s133_s22 = int_to_ptr.vmem [resolvable:$true] %s132_s22 }
   0xa   : > { %p954_p3 = pnand %p572_p0, %p119_p2  ;;  %s904_s24 = smov 12  }
   0xb   : > { %s571_s25 = sadd.s32 4294967294, %s900_s15   ;;  %s965_s26 = sadd.s32 1, %s900_s15  }
   0xc   : > { %p714_p4 = pneg %p954_p3  ;;  %s27_s27 = sadd.s32 1, %s896_s14 }
   0xd   : > { %s24_s28 = ssub.s32 %s900_s15, %s965_s26  ;;  %p34_p7 = scmp.ne.s32.totalorder %s896_s14, %s892_s13 }
   0xe   : > { %p715_p6 = pnand %p714_p4, %p41_p1  ;;  %p25_p8 = scmp.eq.s32.totalorder %s24_s28, 0 }
   0xf   : > { %p35_p9 = scmp.eq.s32.totalorder %s900_s15, 0  ;;  %p40_p10 = scmp.ne.s32.totalorder %s892_s13, %s888_s12 }
  0x10   : > { %717 = dma.hbm_to_vmem [thread:$0]  (!%p715_p6), %s131_s18, 3072, %s133_s22, [#allocation6], %s903_s23, %s903_s23, %s904_s24  }
  0x11   : > { %p106_p11 = scmp.eq.s32.totalorder %s949_s19, 1  ;;  %p981_p12 = por %p41_p1, %p40_p10 }
  0x12   : > { %s977_s29 = scalar_select %p25_p8, %s896_s14, %s27_s27  }
  0x13   : > { %p985_p13 = por %p106_p11, %p34_p7  ;;  %p112_p0 = scmp.eq.s32.totalorder %s571_s25, 1 }
  0x14   : > { %p36_p2 = por %p35_p9, %p34_p7  ;;  %s149_s5 = sand.u32 1, %s896_s14  }
  0x15   : > { %p990_p4 = por %p112_p0, %p40_p10  ;;  %p727_p6 = scmp.lt.s32.totalorder %s900_s15, 2 }
  0x16   : > { %s575_s7 = sshll.u32 %s149_s5, 3  ;;  %s576_s8 = sshll.u32 %s900_s15, 3 }
  0x17   : > { %s157_s11 = scalar_lea.hbm %s1074_s0, %s576_s8  ;;  %s153_s17 = scalar_lea.vmem [#allocation2], %s575_s7 }
  0x18   : > { %s159_s16 = sshll.u32 %s157_s11, 4  ;;  %s161_s18 = sshll.u32 %s153_s17, 4  ;;  %s160_s16 = int_to_ptr.hbm [resolvable:$true] %s159_s16  ;;  %s162_s18 = int_to_ptr.vmem [resolvable:$true] %s161_s18 }
  0x19   : > { %p999_p8 = pnand %p727_p6, %p36_p2  ;;  %s150_s22 = scalar_lea.sflag [#allocation3], %s149_s5 }
  0x1a   : > { %s800_s23 = sshra.s32 %s160_s16, 4  ;;  %s807_s28 = scalar_lea.hbm %s1074_s0, 16  ;;  %s801_s23 = int_to_ptr.hbm [resolvable:$true] %s800_s23 }
  0x1b   : > { %s802_s24 = scalar_lea.hbm %s801_s23, 8  ;;  %p804_p9 = pneg %p999_p8 }
  0x1c   : > { %p803_p7 = scmp.ne.s32.totalorder %s801_s23, %s802_s24  ;;  %p808_p0 = scmp.lt.s32.totalorder %s801_s23, %s1074_s0 }
  0x1d   : > { %p809_p2 = scmp.lt.s32.totalorder %s807_s28, %s802_s24 }
  0x1e   : > { %p805_p10 = pnand %p804_p9, %p803_p7 }
  0x1f   : > { %p810_p6 = por %p809_p2, %p808_p0 }
  0x20   : > { %p806_p11 = pneg %p805_p10 }
  0x22   : > { %p811_p5 = pnand %p810_p6, %p806_p11 }
  0x24   : > { %814 = shalt.err (!%p811_p5)
}
  0x25   : > { %721 = dma.hbm_to_vmem [thread:$0]  (!%p999_p8), %s160_s16, 128, %s162_s18, %s150_s22  }
  0x26   : > { %170 = sbr.rel (%p954_p3) target bundleno = 754 (0x2f2), region = 32  ;;  %s1016_s5 = sand.u32 (!%p954_p3), 1, %s892_s13  }
  0x27   : > { %s578_s9 = sshll.u32 (!%p954_p3), %s1016_s5, 3  ;;  %s173_s10 = scalar_lea.sflag (!%p954_p3), [#allocation3], %s1016_s5 }
  0x28   : > { %s1022_s11 = scalar_lea.vmem (!%p954_p3), [#allocation2], %s578_s9 }
  0x2b   : > { %875 = dma.done.wait (%p981_p12), %s173_s10, 128  }
  0x2c   : > { %877 = vsyncadd (%p981_p12), %s173_s10, 4294967168 }
  0x2d   : > { %879 = dma.done.wait (%p41_p1), [#allocation6], 3072  }
  0x2e   : > { %881 = vsyncadd (%p41_p1), [#allocation6], 4294964224  ;;  %v667_v0 = vld [vmem:[#allocation5 + $0xa8] sm:$0xf]  ;;  %v704_v1 = vld [vmem:[#allocation5 + $0xb0] sm:$0xf0] }
  0x2f   : > { %v703_v2 = vld [vmem:[#allocation5 + $0xac] sm:$0xf]  ;;  %v668_v3 = vor.u32 %v704_v1, %v667_v0  ;;  %v669_v4 = vld [vmem:[#allocation5 + $0xb4] sm:$0xf0]  ;;  %v655_v5 = vld [vmem:[#allocation5 + $0x90] sm:$0xf] }
  0x30   : > { %v701_v6 = vld [vmem:[#allocation5 + $0x98] sm:$0xf0]  ;;  %v672_v7 = vor.u32 %v703_v2, %v669_v4  ;;  %v700_v8 = vld [vmem:[#allocation5 + $0x94] sm:$0xf]  ;;  %v657_v9 = vld [vmem:[#allocation5 + $0x9c] sm:$0xf0] }
  0x31   : > { %368 = vmatpush.bf16.msra.mxu0 %v668_v3  ;;  %v656_v10 = vor.u32 %v701_v6, %v655_v5  ;;  %v660_v11 = vor.u32 %v700_v8, %v657_v9  ;;  %v643_v12 = vld [vmem:[#allocation5 + $0x78] sm:$0xf]  ;;  %v698_v13 = vld [vmem:[#allocation5 + $0x80] sm:$0xf0]  ;;  %v697_v14 = vld [vmem:[#allocation5 + $0x7c] sm:$0xf] }
  0x32   : > { %381 = vmatpush.bf16.msra.mxu1 %v672_v7  ;;  %v645_v15 = vld [vmem:[#allocation5 + $0x84] sm:$0xf0]  ;;  %v644_v16 = vor.u32 %v698_v13, %v643_v12  ;;  %v631_v18 = vld [vmem:[#allocation5 + $0x60] sm:$0xf]  ;;  %v695_v19 = vld [vmem:[#allocation5 + $0x68] sm:$0xf0] }
  0x33   : > { %v648_v17 = vor.u32 %v697_v14, %v645_v15  ;;  %v694_v20 = vld [vmem:[#allocation5 + $0x64] sm:$0xf]  ;;  %v633_v21 = vld [vmem:[#allocation5 + $0x6c] sm:$0xf0]  ;;  %v632_v22 = vor.u32 %v695_v19, %v631_v18  ;;  %v619_v24 = vld [vmem:[#allocation5 + $0x48] sm:$0xf] }
  0x34   : > { %v636_v23 = vor.u32 %v694_v20, %v633_v21  ;;  %v692_v25 = vld [vmem:[#allocation5 + $0x50] sm:$0xf0]  ;;  %v691_v26 = vld [vmem:[#allocation5 + $0x4c] sm:$0xf]  ;;  %v621_v27 = vld [vmem:[#allocation5 + $0x54] sm:$0xf0] }
  0x35   : > { %369 = vmatpush.bf16.msra.mxu0 %v656_v10  ;;  %v620_v28 = vor.u32 %v692_v25, %v619_v24  ;;  %v624_v29 = vor.u32 %v691_v26, %v621_v27  ;;  %v607_v30 = vld [vmem:[#allocation5 + $0x30] sm:$0xf]  ;;  %v689_v31 = vld [vmem:[#allocation5 + $0x38] sm:$0xf0]  ;;  %v688_v32 = vld [vmem:[#allocation5 + $0x34] sm:$0xf] }
  0x36   : > { %382 = vmatpush.bf16.msra.mxu1 %v660_v11  ;;  %v609_v33 = vld [vmem:[#allocation5 + $0x3c] sm:$0xf0]  ;;  %v608_v34 = vor.u32 %v689_v31, %v607_v30  ;;  %v595_v36 = vld [vmem:[#allocation5 + $0x18] sm:$0xf]  ;;  %v686_v37 = vld [vmem:[#allocation5 + $0x20] sm:$0xf0] }
  0x37   : > { %v612_v35 = vor.u32 %v688_v32, %v609_v33  ;;  %v685_v38 = vld [vmem:[#allocation5 + $0x1c] sm:$0xf]  ;;  %v597_v39 = vld [vmem:[#allocation5 + $0x24] sm:$0xf0]  ;;  %v596_v40 = vor.u32 %v686_v37, %v595_v36  ;;  %v583_v42 = vld [vmem:[#allocation5] sm:$0xf] }
  0x38   : > { %v600_v41 = vor.u32 %v685_v38, %v597_v39  ;;  %v683_v43 = vld [vmem:[#allocation5 + $0x8] sm:$0xf0]  ;;  %v682_v44 = vld [vmem:[#allocation5 + $0x4] sm:$0xf]  ;;  %v585_v45 = vld [vmem:[#allocation5 + $0xc] sm:$0xf0] }
  0x39   : > { %370 = vmatpush.bf16.msra.mxu0 %v644_v16  ;;  %v584_v46 = vor.u32 %v683_v43, %v583_v42  ;;  %v206_v47 = vld [vmem:[%s1022_s11] sm:$0xff]  ;;  %v588_v48 = vor.u32 %v682_v44, %v585_v45  ;;  %v702_v60 = vld [vmem:[#allocation5 + $0xa0] sm:$0xf0]  ;;  %v651_v62 = vld [vmem:[#allocation5 + $0x80] sm:$0xf]  ;;  %vm428_vm0 = vcmask 64512  }
  0x3a   : > { %383 = vmatpush.bf16.msra.mxu1 %v648_v17  ;;  %v207_v49 = vpack.c.bf16 %v206_v47, %v206_v47  ;;  %v675_v56 = vld [vmem:[#allocation5 + $0xb0] sm:$0xf]  ;;  %v705_v57 = vld [vmem:[#allocation5 + $0xb8] sm:$0xf0]  ;;  %v663_v58 = vld [vmem:[#allocation5 + $0x98] sm:$0xf] }
  0x3b   : > { %v676_v59 = vor.u32 %v705_v57, %v675_v56  ;;  %v664_v61 = vor.u32 %v702_v60, %v663_v58  ;;  %v699_v63 = vld [vmem:[#allocation5 + $0x88] sm:$0xf0]  ;;  %v639_v1 = vld [vmem:[#allocation5 + $0x68] sm:$0xf]  ;;  %v696_v2 = vld [vmem:[#allocation5 + $0x70] sm:$0xf0] }
  0x3c   : > { %v652_v0 = vor.u32 %v699_v63, %v651_v62  ;;  %v640_v3 = vor.u32 %v696_v2, %v639_v1  ;;  %v627_v4 = vld [vmem:[#allocation5 + $0x50] sm:$0xf]  ;;  %v693_v5 = vld [vmem:[#allocation5 + $0x58] sm:$0xf0]  ;;  %v615_v7 = vld [vmem:[#allocation5 + $0x38] sm:$0xf] }
  0x3d   : > { %371 = vmatpush.bf16.msra.mxu0 %v632_v22  ;;  %394 = vmatpush.bf16.msra.mxu2 %v676_v59  ;;  %v628_v6 = vor.u32 %v693_v5, %v627_v4  ;;  %v690_v8 = vld [vmem:[#allocation5 + $0x40] sm:$0xf0]  ;;  %v603_v10 = vld [vmem:[#allocation5 + $0x20] sm:$0xf]  ;;  %v687_v11 = vld [vmem:[#allocation5 + $0x28] sm:$0xf0] }
  0x3e   : > { %384 = vmatpush.bf16.msra.mxu1 %v636_v23  ;;  %v616_v9 = vor.u32 %v690_v8, %v615_v7  ;;  %v604_v12 = vor.u32 %v687_v11, %v603_v10  ;;  %v591_v14 = vld [vmem:[#allocation5 + $0x8] sm:$0xf]  ;;  %v684_v15 = vld [vmem:[#allocation5 + $0x10] sm:$0xf0]  ;;  %v765_v26 = vld [vmem:[%s1076_s2] ss:$0 sm:$0xff] }
  0x3f   : > { %v592_v17 = vor.u32 %v684_v15, %v591_v14  ;;  %vm457_vm1 = vcmask 1043456   ;;  %s679_s16 = sshll.u32 %s949_s19, 3  ;;  %s204_s22 = scalar_lea.vmem [#allocation7], %s578_s9 }
  0x40   : > { %s486_s21 = scalar_lea.hbm %s1077_s3, %s679_s16  ;;  %s488_s23 = sshll.u32 %s204_s22, 4  ;;  %s489_s23 = int_to_ptr.vmem [resolvable:$true] %s488_s23 }
  0x41   : > { %372 = vmatpush.bf16.msra.mxu0 %v620_v28  ;;  %395 = vmatpush.bf16.msra.mxu2 %v664_v61  ;;  %s490_s24 = sshll.u32 %s486_s21, 4  ;;  %s476_s25 = scalar_lea.sflag [#allocation4], %s1016_s5  ;;  %s491_s24 = int_to_ptr.hbm [resolvable:$true] %s490_s24 }
  0x42   : > { %385 = vmatpush.bf16.msra.mxu1 %v624_v29  ;;  %s844_s27 = sshra.s32 %s491_s24, 4  ;;  %s850_s8 = scalar_lea.hbm %s1077_s3, 16  ;;  %s845_s27 = int_to_ptr.hbm [resolvable:$true] %s844_s27 }
  0x43   : > { %s846_s28 = scalar_lea.hbm %s845_s27, 8  ;;  %p851_p12 = scmp.lt.s32.totalorder %s845_s27, %s1077_s3 }
  0x44   : > { %p847_p1 = scmp.ne.s32.totalorder %s845_s27, %s846_s28  ;;  %p852_p8 = scmp.lt.s32.totalorder %s850_s8, %s846_s28 }
  0x45   : > { %373 = vmatpush.bf16.msra.mxu0 %v608_v34  ;;  %396 = vmatpush.bf16.msra.mxu2 %v652_v0 }
  0x46   : > { %386 = vmatpush.bf16.msra.mxu1 %v612_v35  ;;  %p848_p3 = pnand %p847_p1, %p985_p13  ;;  %p853_p7 = por %p852_p8, %p851_p12 }
  0x48   : > { %p849_p5 = pneg %p848_p3 }
  0x49   : > { %374 = vmatpush.bf16.msra.mxu0 %v596_v40  ;;  %397 = vmatpush.bf16.msra.mxu2 %v640_v3 }
  0x4a   : > { %387 = vmatpush.bf16.msra.mxu1 %v600_v41  ;;  %p854_p9 = pnand %p853_p7, %p849_p5 }
  0x4d   : > { %375 = vmatpush.bf16.msra.mxu0 %v584_v46  ;;  %398 = vmatpush.bf16.msra.mxu2 %v628_v6 }
  0x4e   : > { %388 = vmatpush.bf16.msra.mxu1 %v588_v48 }
  0x50   : > { %376 = vmatmul.bf16.vlgmr.msra.gmra.mxu0 %v207_v49 }
  0x51   : > { %389 = vmatmul.bf16.vlgmr.msra.gmra.mxu1 %v207_v49  ;;  %399 = vmatpush.bf16.msra.mxu2 %v616_v9 }
  0x55   : > { %400 = vmatpush.bf16.msra.mxu2 %v604_v12 }
  0x59   : > { %401 = vmatpush.bf16.msra.mxu2 %v592_v17 }
  0x5c   : > { %402 = vmatmul.bf16.vlgmr.msra.gmra.mxu2 %v207_v49 }
  0xcd   : > { %v377_v50 = vpop.f32.mrf.mxu0 }
  0xce   : > { %v390_v51 = vpop.f32.mrf.mxu1  ;;  %v412_v53 = vpack.c.bf16 %v377_v50, %v377_v50 }
  0xcf   : > { %v413_v52 = vpack.c.bf16 %v390_v51, %v390_v51 }
  0xd1   : > { %422 = vmatpush.bf16.xpose.msra.mxu3 %v413_v52 }
  0xd5   : > { %v379_v54 = vpop.f32.mrf.mxu0 }
  0xd6   : > { %v392_v55 = vpop.f32.mrf.mxu1 }
  0xd8   : > { %423 = vmatmul.bf16.vlgmr.msra.gmra.mxu3 %v412_v53 }
  0xdf   : > { %v403_v24 = vpop.f32.mrf.mxu2 }
  0xe0   : > { %v411_v27 = vadd.f32 %v765_v26, %v403_v24 }
  0xe2   : > { %v414_v28 = vpack.c.bf16 %v411_v27, %v411_v27 }
  0xe4   : > { %v459_v29 = vsel %vm457_vm1, %v414_v28, 0 }
  0xe5   : > { %468 = vmatpush.bf16.msrb.mxu3 %v459_v29 }
  0xe7   : > { %v405_v25 = vpop.f32.mrf.mxu2 }
 0x15b   : > { %v424_v13 = vpop.f32.mrf.mxu3 }
 0x15c   : > { %v429_v16 = vsel %vm428_vm0, %v424_v13, -inf }
 0x15d   : > { %430 = vmax.xlane.f32.xlu0 %v429_v16 }
 0x163   : > { %v426_v18 = vpop.f32.mrf.mxu3 }
 0x1d0   : > { %v431_v19 = vpop.xlane.xlu0 %430 }
 0x1d1   : > { %v432_v20 = vsub.f32 %v424_v13, %v431_v19 }
 0x1d3   : > { %v433_v21 = vmul.f32 1.442695, %v432_v20 }
 0x1d5   : > { %766 = vpow2.f32 %v433_v21 }
 0x1db   : > { %v767_v22 = vpop.eup %766 }
 0x1dc   : > { %v435_v23 = vsel %vm428_vm0, %v767_v22, 0.0 }
 0x1dd   : > { %436 = vadd.xlane.f32.xlu0 %v435_v23 }
 0x250   : > { %v437_v30 = vpop.xlane.xlu0 %436 }
 0x251   : > { %768 = vrcp.f32 %v437_v30  ;;  %v449_v34 = vand.u32 2147483648, %v437_v30  ;;  %v447_v36 = vand.u32 2147483647, %v437_v30  ;;  %vm443_vm3 = vweird.f32 %v437_v30 }
 0x253   : > { %v450_v38 = vor.u32 1.1754944e-38, %v449_v34  ;;  %vm448_vm5 = vcmp.eq.f32.partialorder %v447_v36, 8.507059e+37 }
 0x257   : > { %v769_v31 = vpop.eup %768 }
 0x258   : > { %v439_v32 = vmul.f32 %v769_v31, %v437_v30  ;;  %vm444_vm2 = vweird.f32 %v769_v31 }
 0x259   : > { %vm445_vm4 = vmor %vm443_vm3, %vm444_vm2 }
 0x25a   : > { %v440_v33 = vsub.f32 1.0, %v439_v32 }
 0x25c   : > { %v441_v35 = vmul.f32 %v769_v31, %v440_v33 }
 0x25e   : > { %v442_v37 = vadd.f32 %v769_v31, %v441_v35 }
 0x260   : > { %v446_v39 = vsel %vm445_vm4, %v769_v31, %v442_v37 }
 0x261   : > { %v451_v40 = vsel %vm448_vm5, %v450_v38, %v446_v39 }
 0x262   : > { %v452_v41 = vmul.f32 %v767_v22, %v451_v40 }
 0x264   : > { %v453_v42 = vpack.c.bf16 %v452_v41, %v452_v41 }
 0x266   : > { %677 = vmatmul.msk.bf16.vlgmr.msrb.gmra.mxu3 %vm428_vm0, %v453_v42 }
 0x2e9   : > { %v470_v43 = vpop.f32.mrf.mxu3 }
 0x2ea   : > { %474 = vst [vmem:[%s204_s22] sm:$0xff] %v470_v43 }
 0x2eb   : > { %857 = shalt.err (!%p854_p9)
}
 0x2ec   : > { %712 = dma.vmem_to_hbm [thread:$0]  (%p985_p13), %s489_s23, 128, %s491_s24, %s476_s25  }
 0x2f1   : > { %v472_v44 = vpop.f32.mrf.mxu3 }
 0x2f2 PF: > { %s502_s5 = sand.u32 1, %s888_s12   ;;  %p1083_p10 = scmp.ge.s32.totalorder %s900_s15, 2 }
 0x2f3   : > { %s503_s11 = scalar_lea.sflag [#allocation4], %s502_s5 }
 0x2f4   : > { %p723_p11 = pnand %p1083_p10, %p990_p4 }
 0x2f6   : > { %p724_p0 = pneg %p723_p11 }
 0x2f8   : > { %883 = dma.done.wait (%p724_p0), %s503_s11, 128  }
 0x2f9   : > { %885 = vsyncadd (%p724_p0), %s503_s11, 4294967168  ;;  %p17_p2 = scmp.ge.s32.totalorder %s965_s26, 4   ;;  %s1084_s12 = smov %s892_s13 }
 0x2fa   : > { %s1085_s13 = smov %s896_s14  ;;  %s1086_s14 = smov %s977_s29 }
 0x2fb   : > { %s1087_s15 = smov %s965_s26  ;;  %19 = sbr.rel (!%p17_p2) target bundleno = 6 (0x6), region = 81 }
 0x300   :  { %509 = vsyncpa [#allocation3], 1 }
 0x301   :  { %511 = vsyncpa [#allocation3 + $0x1], 1 }
 0x302   :  { %512 = vsyncpa [#allocation6], 1 }
 0x303   :  { %513 = vsyncpa [#allocation4], 1 }
 0x304   :  { %515 = vsyncpa [#allocation4 + $0x1], 1 }

// kernel: tpu_custom_call.1
= control target key start
LH: loop header
LB: loop body
LE: loop exit
PB: predicated region body
PF: predicated region fallthrough
CT: control target
= control target key end

     0   :  { %8 = vsyncpa [#allocation3], 0  ;;  %s1074_s0 = inlined_call_operand.hbm [shape: f32[2,8,128], index: 0, kind: input, shape index: {}]   ;;  %s1075_s1 = inlined_call_operand.hbm [shape: bf16[128,384], index: 1, kind: input, shape index: {}]   ;;  %s1076_s2 = inlined_call_operand.vmem [shape: f32[1,128], index: 2, kind: input, shape index: {}]   ;;  %s1077_s3 = inlined_call_operand.hbm [shape: f32[2,8,128], index: 3, kind: output, shape index: {}]  }
   0x1   :  { %10 = vsyncpa [#allocation3 + $0x1], 0 }
   0x2   :  { %11 = vsyncpa [#allocation6], 0 }
   0x3   :  { %12 = vsyncpa [#allocation4], 0 }
   0x4   :  { %14 = vsyncpa [#allocation4 + $0x1], 0  ;;  %s925_s12 = smov 0   ;;  %s927_s13 = smov 0  }
   0x5   :  { %s929_s14 = smov 0   ;;  %s931_s15 = smov 0  }
   0x6 LB: > { %s130_s18 = sshll.u32 %s1075_s1, 4  ;;  %s949_s19 = sadd.s32 4294967295, %s900_s15   ;;  %s900_s15 = sphi %s931_s15, %s1087_s15   ;;  %s896_s14 = sphi %s929_s14, %s1086_s14   ;;  %s892_s13 = sphi %s927_s13, %s1085_s13   ;;  %s888_s12 = sphi %s925_s12, %s1084_s12   ;;  %s131_s18 = int_to_ptr.hbm [resolvable:$true] %s130_s18 }
   0x7   : > { %p572_p0 = scmp.ge.s32.totalorder %s900_s15, 1  ;;  %p41_p1 = scmp.eq.s32.totalorder %s949_s19, 0 }
   0x8   : > { %p119_p2 = scmp.lt.s32.totalorder %s900_s15, 3  ;;  %s902_s21 = smov [#allocation5]  }
   0x9   : > { %s132_s22 = sshll.u32 %s902_s21, 4  ;;  %s903_s23 = smov 192   ;;  %s133_s22 = int_to_ptr.vmem [resolvable:$true] %s132_s22 }
   0xa   : > { %p954_p3 = pnand %p572_p0, %p119_p2  ;;  %s904_s24 = smov 12  }
   0xb   : > { %s571_s25 = sadd.s32 4294967294, %s900_s15   ;;  %s965_s26 = sadd.s32 1, %s900_s15  }
   0xc   : > { %p714_p4 = pneg %p954_p3  ;;  %s27_s27 = sadd.s32 1, %s896_s14 }
   0xd   : > { %s24_s28 = ssub.s32 %s900_s15, %s965_s26  ;;  %p34_p7 = scmp.ne.s32.totalorder %s896_s14, %s892_s13 }
   0xe   : > { %p715_p6 = pnand %p714_p4, %p41_p1  ;;  %p25_p8 = scmp.eq.s32.totalorder %s24_s28, 0 }
   0xf   : > { %p35_p9 = scmp.eq.s32.totalorder %s900_s15, 0  ;;  %p40_p10 = scmp.ne.s32.totalorder %s892_s13, %s888_s12 }
  0x10   : > { %717 = dma.hbm_to_vmem [thread:$0]  (!%p715_p6), %s131_s18, 3072, %s133_s22, [#allocation6], %s903_s23, %s903_s23, %s904_s24  }
  0x11   : > { %p106_p11 = scmp.eq.s32.totalorder %s949_s19, 1  ;;  %p981_p12 = por %p41_p1, %p40_p10 }
  0x12   : > { %s977_s29 = scalar_select %p25_p8, %s896_s14, %s27_s27  }
  0x13   : > { %p985_p13 = por %p106_p11, %p34_p7  ;;  %p112_p0 = scmp.eq.s32.totalorder %s571_s25, 1 }
  0x14   : > { %p36_p2 = por %p35_p9, %p34_p7  ;;  %s149_s5 = sand.u32 1, %s896_s14  }
  0x15   : > { %p990_p4 = por %p112_p0, %p40_p10  ;;  %p727_p6 = scmp.lt.s32.totalorder %s900_s15, 2 }
  0x16   : > { %s575_s7 = sshll.u32 %s149_s5, 3  ;;  %s576_s8 = sshll.u32 %s900_s15, 3 }
  0x17   : > { %s157_s11 = scalar_lea.hbm %s1074_s0, %s576_s8  ;;  %s153_s17 = scalar_lea.vmem [#allocation2], %s575_s7 }
  0x18   : > { %s159_s16 = sshll.u32 %s157_s11, 4  ;;  %s161_s18 = sshll.u32 %s153_s17, 4  ;;  %s160_s16 = int_to_ptr.hbm [resolvable:$true] %s159_s16  ;;  %s162_s18 = int_to_ptr.vmem [resolvable:$true] %s161_s18 }
  0x19   : > { %p999_p8 = pnand %p727_p6, %p36_p2  ;;  %s150_s22 = scalar_lea.sflag [#allocation3], %s149_s5 }
  0x1a   : > { %s800_s23 = sshra.s32 %s160_s16, 4  ;;  %s807_s28 = scalar_lea.hbm %s1074_s0, 16  ;;  %s801_s23 = int_to_ptr.hbm [resolvable:$true] %s800_s23 }
  0x1b   : > { %s802_s24 = scalar_lea.hbm %s801_s23, 8  ;;  %p804_p9 = pneg %p999_p8 }
  0x1c   : > { %p803_p7 = scmp.ne.s32.totalorder %s801_s23, %s802_s24  ;;  %p808_p0 = scmp.lt.s32.totalorder %s801_s23, %s1074_s0 }
  0x1d   : > { %p809_p2 = scmp.lt.s32.totalorder %s807_s28, %s802_s24 }
  0x1e   : > { %p805_p10 = pnand %p804_p9, %p803_p7 }
  0x1f   : > { %p810_p6 = por %p809_p2, %p808_p0 }
  0x20   : > { %p806_p11 = pneg %p805_p10 }
  0x22   : > { %p811_p5 = pnand %p810_p6, %p806_p11 }
  0x24   : > { %814 = shalt.err (!%p811_p5)
}
  0x25   : > { %721 = dma.hbm_to_vmem [thread:$0]  (!%p999_p8), %s160_s16, 128, %s162_s18, %s150_s22  }
  0x26   : > { %170 = sbr.rel (%p954_p3) target bundleno = 754 (0x2f2), region = 32  ;;  %s1016_s5 = sand.u32 (!%p954_p3), 1, %s892_s13  }
  0x27   : > { %s578_s9 = sshll.u32 (!%p954_p3), %s1016_s5, 3  ;;  %s173_s10 = scalar_lea.sflag (!%p954_p3), [#allocation3], %s1016_s5 }
  0x28   : > { %s1022_s11 = scalar_lea.vmem (!%p954_p3), [#allocation2], %s578_s9 }
  0x2b   : > { %875 = dma.done.wait (%p981_p12), %s173_s10, 128  }
  0x2c   : > { %877 = vsyncadd (%p981_p12), %s173_s10, 4294967168 }
  0x2d   : > { %879 = dma.done.wait (%p41_p1), [#allocation6], 3072  }
  0x2e   : > { %881 = vsyncadd (%p41_p1), [#allocation6], 4294964224  ;;  %v667_v0 = vld [vmem:[#allocation5 + $0xa8] sm:$0xf]  ;;  %v704_v1 = vld [vmem:[#allocation5 + $0xb0] sm:$0xf0] }
  0x2f   : > { %v703_v2 = vld [vmem:[#allocation5 + $0xac] sm:$0xf]  ;;  %v668_v3 = vor.u32 %v704_v1, %v667_v0  ;;  %v669_v4 = vld [vmem:[#allocation5 + $0xb4] sm:$0xf0]  ;;  %v655_v5 = vld [vmem:[#allocation5 + $0x90] sm:$0xf] }
  0x30   : > { %v701_v6 = vld [vmem:[#allocation5 + $0x98] sm:$0xf0]  ;;  %v672_v7 = vor.u32 %v703_v2, %v669_v4  ;;  %v700_v8 = vld [vmem:[#allocation5 + $0x94] sm:$0xf]  ;;  %v657_v9 = vld [vmem:[#allocation5 + $0x9c] sm:$0xf0] }
  0x31   : > { %368 = vmatpush.bf16.msra.mxu0 %v668_v3  ;;  %v656_v10 = vor.u32 %v701_v6, %v655_v5  ;;  %v660_v11 = vor.u32 %v700_v8, %v657_v9  ;;  %v643_v12 = vld [vmem:[#allocation5 + $0x78] sm:$0xf]  ;;  %v698_v13 = vld [vmem:[#allocation5 + $0x80] sm:$0xf0]  ;;  %v697_v14 = vld [vmem:[#allocation5 + $0x7c] sm:$0xf] }
  0x32   : > { %381 = vmatpush.bf16.msra.mxu1 %v672_v7  ;;  %v645_v15 = vld [vmem:[#allocation5 + $0x84] sm:$0xf0]  ;;  %v644_v16 = vor.u32 %v698_v13, %v643_v12  ;;  %v631_v18 = vld [vmem:[#allocation5 + $0x60] sm:$0xf]  ;;  %v695_v19 = vld [vmem:[#allocation5 + $0x68] sm:$0xf0] }
  0x33   : > { %v648_v17 = vor.u32 %v697_v14, %v645_v15  ;;  %v694_v20 = vld [vmem:[#allocation5 + $0x64] sm:$0xf]  ;;  %v633_v21 = vld [vmem:[#allocation5 + $0x6c] sm:$0xf0]  ;;  %v632_v22 = vor.u32 %v695_v19, %v631_v18  ;;  %v619_v24 = vld [vmem:[#allocation5 + $0x48] sm:$0xf] }
  0x34   : > { %v636_v23 = vor.u32 %v694_v20, %v633_v21  ;;  %v692_v25 = vld [vmem:[#allocation5 + $0x50] sm:$0xf0]  ;;  %v691_v26 = vld [vmem:[#allocation5 + $0x4c] sm:$0xf]  ;;  %v621_v27 = vld [vmem:[#allocation5 + $0x54] sm:$0xf0] }
  0x35   : > { %369 = vmatpush.bf16.msra.mxu0 %v656_v10  ;;  %v620_v28 = vor.u32 %v692_v25, %v619_v24  ;;  %v624_v29 = vor.u32 %v691_v26, %v621_v27  ;;  %v607_v30 = vld [vmem:[#allocation5 + $0x30] sm:$0xf]  ;;  %v689_v31 = vld [vmem:[#allocation5 + $0x38] sm:$0xf0]  ;;  %v688_v32 = vld [vmem:[#allocation5 + $0x34] sm:$0xf] }
  0x36   : > { %382 = vmatpush.bf16.msra.mxu1 %v660_v11  ;;  %v609_v33 = vld [vmem:[#allocation5 + $0x3c] sm:$0xf0]  ;;  %v608_v34 = vor.u32 %v689_v31, %v607_v30  ;;  %v595_v36 = vld [vmem:[#allocation5 + $0x18] sm:$0xf]  ;;  %v686_v37 = vld [vmem:[#allocation5 + $0x20] sm:$0xf0] }
  0x37   : > { %v612_v35 = vor.u32 %v688_v32, %v609_v33  ;;  %v685_v38 = vld [vmem:[#allocation5 + $0x1c] sm:$0xf]  ;;  %v597_v39 = vld [vmem:[#allocation5 + $0x24] sm:$0xf0]  ;;  %v596_v40 = vor.u32 %v686_v37, %v595_v36  ;;  %v583_v42 = vld [vmem:[#allocation5] sm:$0xf] }
  0x38   : > { %v600_v41 = vor.u32 %v685_v38, %v597_v39  ;;  %v683_v43 = vld [vmem:[#allocation5 + $0x8] sm:$0xf0]  ;;  %v682_v44 = vld [vmem:[#allocation5 + $0x4] sm:$0xf]  ;;  %v585_v45 = vld [vmem:[#allocation5 + $0xc] sm:$0xf0] }
  0x39   : > { %370 = vmatpush.bf16.msra.mxu0 %v644_v16  ;;  %v584_v46 = vor.u32 %v683_v43, %v583_v42  ;;  %v206_v47 = vld [vmem:[%s1022_s11] sm:$0xff]  ;;  %v588_v48 = vor.u32 %v682_v44, %v585_v45  ;;  %v702_v60 = vld [vmem:[#allocation5 + $0xa0] sm:$0xf0]  ;;  %v651_v62 = vld [vmem:[#allocation5 + $0x80] sm:$0xf]  ;;  %vm428_vm0 = vcmask 64512  }
  0x3a   : > { %383 = vmatpush.bf16.msra.mxu1 %v648_v17  ;;  %v207_v49 = vpack.c.bf16 %v206_v47, %v206_v47  ;;  %v675_v56 = vld [vmem:[#allocation5 + $0xb0] sm:$0xf]  ;;  %v705_v57 = vld [vmem:[#allocation5 + $0xb8] sm:$0xf0]  ;;  %v663_v58 = vld [vmem:[#allocation5 + $0x98] sm:$0xf] }
  0x3b   : > { %v676_v59 = vor.u32 %v705_v57, %v675_v56  ;;  %v664_v61 = vor.u32 %v702_v60, %v663_v58  ;;  %v699_v63 = vld [vmem:[#allocation5 + $0x88] sm:$0xf0]  ;;  %v639_v1 = vld [vmem:[#allocation5 + $0x68] sm:$0xf]  ;;  %v696_v2 = vld [vmem:[#allocation5 + $0x70] sm:$0xf0] }
  0x3c   : > { %v652_v0 = vor.u32 %v699_v63, %v651_v62  ;;  %v640_v3 = vor.u32 %v696_v2, %v639_v1  ;;  %v627_v4 = vld [vmem:[#allocation5 + $0x50] sm:$0xf]  ;;  %v693_v5 = vld [vmem:[#allocation5 + $0x58] sm:$0xf0]  ;;  %v615_v7 = vld [vmem:[#allocation5 + $0x38] sm:$0xf] }
  0x3d   : > { %371 = vmatpush.bf16.msra.mxu0 %v632_v22  ;;  %394 = vmatpush.bf16.msra.mxu2 %v676_v59  ;;  %v628_v6 = vor.u32 %v693_v5, %v627_v4  ;;  %v690_v8 = vld [vmem:[#allocation5 + $0x40] sm:$0xf0]  ;;  %v603_v10 = vld [vmem:[#allocation5 + $0x20] sm:$0xf]  ;;  %v687_v11 = vld [vmem:[#allocation5 + $0x28] sm:$0xf0] }
  0x3e   : > { %384 = vmatpush.bf16.msra.mxu1 %v636_v23  ;;  %v616_v9 = vor.u32 %v690_v8, %v615_v7  ;;  %v604_v12 = vor.u32 %v687_v11, %v603_v10  ;;  %v591_v14 = vld [vmem:[#allocation5 + $0x8] sm:$0xf]  ;;  %v684_v15 = vld [vmem:[#allocation5 + $0x10] sm:$0xf0]  ;;  %v765_v26 = vld [vmem:[%s1076_s2] ss:$0 sm:$0xff] }
  0x3f   : > { %v592_v17 = vor.u32 %v684_v15, %v591_v14  ;;  %vm457_vm1 = vcmask 1043456   ;;  %s679_s16 = sshll.u32 %s949_s19, 3  ;;  %s204_s22 = scalar_lea.vmem [#allocation7], %s578_s9 }
  0x40   : > { %s486_s21 = scalar_lea.hbm %s1077_s3, %s679_s16  ;;  %s488_s23 = sshll.u32 %s204_s22, 4  ;;  %s489_s23 = int_to_ptr.vmem [resolvable:$true] %s488_s23 }
  0x41   : > { %372 = vmatpush.bf16.msra.mxu0 %v620_v28  ;;  %395 = vmatpush.bf16.msra.mxu2 %v664_v61  ;;  %s490_s24 = sshll.u32 %s486_s21, 4  ;;  %s476_s25 = scalar_lea.sflag [#allocation4], %s1016_s5  ;;  %s491_s24 = int_to_ptr.hbm [resolvable:$true] %s490_s24 }
  0x42   : > { %385 = vmatpush.bf16.msra.mxu1 %v624_v29  ;;  %s844_s27 = sshra.s32 %s491_s24, 4  ;;  %s850_s8 = scalar_lea.hbm %s1077_s3, 16  ;;  %s845_s27 = int_to_ptr.hbm [resolvable:$true] %s844_s27 }
  0x43   : > { %s846_s28 = scalar_lea.hbm %s845_s27, 8  ;;  %p851_p12 = scmp.lt.s32.totalorder %s845_s27, %s1077_s3 }
  0x44   : > { %p847_p1 = scmp.ne.s32.totalorder %s845_s27, %s846_s28  ;;  %p852_p8 = scmp.lt.s32.totalorder %s850_s8, %s846_s28 }
  0x45   : > { %373 = vmatpush.bf16.msra.mxu0 %v608_v34  ;;  %396 = vmatpush.bf16.msra.mxu2 %v652_v0 }
  0x46   : > { %386 = vmatpush.bf16.msra.mxu1 %v612_v35  ;;  %p848_p3 = pnand %p847_p1, %p985_p13  ;;  %p853_p7 = por %p852_p8, %p851_p12 }
  0x48   : > { %p849_p5 = pneg %p848_p3 }
  0x49   : > { %374 = vmatpush.bf16.msra.mxu0 %v596_v40  ;;  %397 = vmatpush.bf16.msra.mxu2 %v640_v3 }
  0x4a   : > { %387 = vmatpush.bf16.msra.mxu1 %v600_v41  ;;  %p854_p9 = pnand %p853_p7, %p849_p5 }
  0x4d   : > { %375 = vmatpush.bf16.msra.mxu0 %v584_v46  ;;  %398 = vmatpush.bf16.msra.mxu2 %v628_v6 }
  0x4e   : > { %388 = vmatpush.bf16.msra.mxu1 %v588_v48 }
  0x50   : > { %376 = vmatmul.bf16.vlgmr.msra.gmra.mxu0 %v207_v49 }
  0x51   : > { %389 = vmatmul.bf16.vlgmr.msra.gmra.mxu1 %v207_v49  ;;  %399 = vmatpush.bf16.msra.mxu2 %v616_v9 }
  0x55   : > { %400 = vmatpush.bf16.msra.mxu2 %v604_v12 }
  0x59   : > { %401 = vmatpush.bf16.msra.mxu2 %v592_v17 }
  0x5c   : > { %402 = vmatmul.bf16.vlgmr.msra.gmra.mxu2 %v207_v49 }
  0xcd   : > { %v377_v50 = vpop.f32.mrf.mxu0 }
  0xce   : > { %v390_v51 = vpop.f32.mrf.mxu1  ;;  %v412_v53 = vpack.c.bf16 %v377_v50, %v377_v50 }
  0xcf   : > { %v413_v52 = vpack.c.bf16 %v390_v51, %v390_v51 }
  0xd1   : > { %422 = vmatpush.bf16.xpose.msra.mxu3 %v413_v52 }
  0xd5   : > { %v379_v54 = vpop.f32.mrf.mxu0 }
  0xd6   : > { %v392_v55 = vpop.f32.mrf.mxu1 }
  0xd8   : > { %423 = vmatmul.bf16.vlgmr.msra.gmra.mxu3 %v412_v53 }
  0xdf   : > { %v403_v24 = vpop.f32.mrf.mxu2 }
  0xe0   : > { %v411_v27 = vadd.f32 %v765_v26, %v403_v24 }
  0xe2   : > { %v414_v28 = vpack.c.bf16 %v411_v27, %v411_v27 }
  0xe4   : > { %v459_v29 = vsel %vm457_vm1, %v414_v28, 0 }
  0xe5   : > { %468 = vmatpush.bf16.msrb.mxu3 %v459_v29 }
  0xe7   : > { %v405_v25 = vpop.f32.mrf.mxu2 }
 0x15b   : > { %v424_v13 = vpop.f32.mrf.mxu3 }
 0x15c   : > { %v429_v16 = vsel %vm428_vm0, %v424_v13, -inf }
 0x15d   : > { %430 = vmax.xlane.f32.xlu0 %v429_v16 }
 0x163   : > { %v426_v18 = vpop.f32.mrf.mxu3 }
 0x1d0   : > { %v431_v19 = vpop.xlane.xlu0 %430 }
 0x1d1   : > { %v432_v20 = vsub.f32 %v424_v13, %v431_v19 }
 0x1d3   : > { %v433_v21 = vmul.f32 1.442695, %v432_v20 }
 0x1d5   : > { %766 = vpow2.f32 %v433_v21 }
 0x1db   : > { %v767_v22 = vpop.eup %766 }
 0x1dc   : > { %v435_v23 = vsel %vm428_vm0, %v767_v22, 0.0 }
 0x1dd   : > { %436 = vadd.xlane.f32.xlu0 %v435_v23 }
 0x250   : > { %v437_v30 = vpop.xlane.xlu0 %436 }
 0x251   : > { %768 = vrcp.f32 %v437_v30  ;;  %v449_v34 = vand.u32 2147483648, %v437_v30  ;;  %v447_v36 = vand.u32 2147483647, %v437_v30  ;;  %vm443_vm3 = vweird.f32 %v437_v30 }
 0x253   : > { %v450_v38 = vor.u32 1.1754944e-38, %v449_v34  ;;  %vm448_vm5 = vcmp.eq.f32.partialorder %v447_v36, 8.507059e+37 }
 0x257   : > { %v769_v31 = vpop.eup %768 }
 0x258   : > { %v439_v32 = vmul.f32 %v769_v31, %v437_v30  ;;  %vm444_vm2 = vweird.f32 %v769_v31 }
 0x259   : > { %vm445_vm4 = vmor %vm443_vm3, %vm444_vm2 }
 0x25a   : > { %v440_v33 = vsub.f32 1.0, %v439_v32 }
 0x25c   : > { %v441_v35 = vmul.f32 %v769_v31, %v440_v33 }
 0x25e   : > { %v442_v37 = vadd.f32 %v769_v31, %v441_v35 }
 0x260   : > { %v446_v39 = vsel %vm445_vm4, %v769_v31, %v442_v37 }
 0x261   : > { %v451_v40 = vsel %vm448_vm5, %v450_v38, %v446_v39 }
 0x262   : > { %v452_v41 = vmul.f32 %v767_v22, %v451_v40 }
 0x264   : > { %v453_v42 = vpack.c.bf16 %v452_v41, %v452_v41 }
 0x266   : > { %677 = vmatmul.msk.bf16.vlgmr.msrb.gmra.mxu3 %vm428_vm0, %v453_v42 }
 0x2e9   : > { %v470_v43 = vpop.f32.mrf.mxu3 }
 0x2ea   : > { %474 = vst [vmem:[%s204_s22] sm:$0xff] %v470_v43 }
 0x2eb   : > { %857 = shalt.err (!%p854_p9)
}
 0x2ec   : > { %712 = dma.vmem_to_hbm [thread:$0]  (%p985_p13), %s489_s23, 128, %s491_s24, %s476_s25  }
 0x2f1   : > { %v472_v44 = vpop.f32.mrf.mxu3 }
 0x2f2 PF: > { %s502_s5 = sand.u32 1, %s888_s12   ;;  %p1083_p10 = scmp.ge.s32.totalorder %s900_s15, 2 }
 0x2f3   : > { %s503_s11 = scalar_lea.sflag [#allocation4], %s502_s5 }
 0x2f4   : > { %p723_p11 = pnand %p1083_p10, %p990_p4 }
 0x2f6   : > { %p724_p0 = pneg %p723_p11 }
 0x2f8   : > { %883 = dma.done.wait (%p724_p0), %s503_s11, 128  }
 0x2f9   : > { %885 = vsyncadd (%p724_p0), %s503_s11, 4294967168  ;;  %p17_p2 = scmp.ge.s32.totalorder %s965_s26, 4   ;;  %s1084_s12 = smov %s892_s13 }
 0x2fa   : > { %s1085_s13 = smov %s896_s14  ;;  %s1086_s14 = smov %s977_s29 }
 0x2fb   : > { %s1087_s15 = smov %s965_s26  ;;  %19 = sbr.rel (!%p17_p2) target bundleno = 6 (0x6), region = 81 }
 0x300   :  { %509 = vsyncpa [#allocation3], 1 }
 0x301   :  { %511 = vsyncpa [#allocation3 + $0x1], 1 }
 0x302   :  { %512 = vsyncpa [#allocation6], 1 }
 0x303   :  { %513 = vsyncpa [#allocation4], 1 }
 0x304   :  { %515 = vsyncpa [#allocation4 + $0x1], 1 }

</bundles_post_ra>
